<compile_context>
chip_gen: v6e
topology: v6e:2x2x1
jax: 0.10.0
libtpu: 0.0.40
codegen_flags: <defaults>
</compile_context>

<pallas_src>
import jax
import jax.numpy as jnp
from jax.experimental import pallas as pl
from jax.experimental.pallas import tpu as pltpu

_LANE = 128
# 1024 rows x 128 lanes x 4 B = 0.5 MiB per channel per block.
_ROW_BUDGET = 1024


def _recip(x):
    """EUP approximate reciprocal + one Newton-Raphson step (~f32 accurate)."""
    y = pl.reciprocal(x, approx=True)
    return y * (2.0 - x * y)


def rgb2hsv_kernel(x_ref, o_ref):
    # Block: (bt, 3, tile_rows, 128)
    r = x_ref[:, 0, :, :]
    g = x_ref[:, 1, :, :]
    b = x_ref[:, 2, :, :]

    v = jnp.maximum(jnp.maximum(r, g), b)
    mn = jnp.minimum(jnp.minimum(r, g), b)
    d = v - mn                                   # v_plus_min in the torch code

    s = d * _recip(v + 0.0001)
    scale = _recip(d + 0.0001) * (1.0 / 6.0)     # (60 / (d + eps)) / 360

    # argmax over channels with first-occurrence tie-breaking (matches ref).
    is_r = jnp.logical_and(r >= g, r >= b)                    # idx == 0
    is_g = jnp.logical_and(jnp.logical_not(is_r), g >= b)     # idx == 1
    # otherwise idx == 2

    diff = jnp.where(is_r, g - b, jnp.where(is_g, b - r, r - g))
    offs = jnp.where(is_r, 0.0, jnp.where(is_g, 1.0 / 3.0, 2.0 / 3.0))
    h = offs + diff * scale
    # |diff| <= d so |diff * scale| < 1/6 and h in (-1/6, 5/6); one negative
    # wrap lands in [0, 1) -> the reference's `% 360` is redundant.  (Only
    # true because of the +1e-4 epsilon in the denominator.)
    h = jnp.where(h < 0.0, h + 1.0, h)

    o_ref[:, 0, :, :] = h
    o_ref[:, 1, :, :] = s
    o_ref[:, 2, :, :] = v


def _largest_divisor_leq(n, cap):
    cap = max(1, min(n, cap))
    for d in range(cap, 0, -1):
        if n % d == 0:
            return d
    return 1


def rgb2hsv(rgb):
    """rgb: (B, 3, W, H) float32 -> (B, 3, W, H) HSV (H, S in [0,1], V = max)."""
    B, C, W, H = rgb.shape
    assert C == 3, "RGB2HSV expects 3 channels"
    N = W * H

    if N % _LANE == 0:
        rows = N // _LANE
        x = rgb.reshape(B, 3, rows, _LANE)       # free: pure metadata reshape
        aligned = True
    else:
        # TODO(synk): mask the ragged tail in-kernel instead of padding; the
        # wrapper pad + final slice cost one extra HBM pass on this rare path.
        n_pad = (-N) % _LANE
        x = jnp.pad(rgb.reshape(B, 3, N), ((0, 0), (0, 0), (0, n_pad)))
        rows = (N + n_pad) // _LANE
        x = x.reshape(B, 3, rows, _LANE)
        aligned = False

    # Fold batch elements into the block while staying within the row budget
    # (amortizes per-grid-step overhead for small images).
    bt = _largest_divisor_leq(B, max(1, _ROW_BUDGET // rows))
    tile_rows = min(rows, _ROW_BUDGET)
    grid_b = B // bt
    grid_r = -(-rows // tile_rows)

    # v7x has 2 TensorCores per chip: guarantee >= 2 parallel blocks whenever
    # there is enough work to make the split worthwhile.
    if grid_b * grid_r < 2 and rows >= 16:
        tile_rows = ((rows + 1) // 2 + 7) // 8 * 8   # multiple of 8 sublanes
        grid_r = -(-rows // tile_rows)

    out = pl.pallas_call(
        rgb2hsv_kernel,
        out_shape=jax.ShapeDtypeStruct((B, 3, rows, _LANE), rgb.dtype),
        grid_spec=pltpu.PrefetchScalarGridSpec(
            num_scalar_prefetch=0,
            grid=(grid_b, grid_r),
            in_specs=[pl.BlockSpec((bt, 3, tile_rows, _LANE),
                                   lambda i, t: (i, 0, t, 0))],
            out_specs=pl.BlockSpec((bt, 3, tile_rows, _LANE),
                                   lambda i, t: (i, 0, t, 0)),
        ),
        compiler_params=pltpu.CompilerParams(
            dimension_semantics=("parallel", "parallel")),
    )(x)

    if aligned:
        return out.reshape(B, 3, W, H)
    return out.reshape(B, 3, rows * _LANE)[:, :, :N].reshape(B, 3, W, H)


def rgb2hsv_ref(rgb):
    """Pure-JAX reference mirroring the PyTorch module for a sanity check."""
    r, g, b = rgb[:, 0], rgb[:, 1], rgb[:, 2]
    V = jnp.max(rgb, axis=1)
    idx = jnp.argmax(rgb, axis=1)
    mn = jnp.min(rgb, axis=1)
    d = V - mn
    S = d / (V + 0.0001)
    h0 = 60.0 * (g - b) / (d + 0.0001)
    h1 = 120.0 + 60.0 * (b - r) / (d + 0.0001)
    h2 = 240.0 + 60.0 * (r - g) / (d + 0.0001)
    H = jnp.where(idx == 0, h0, jnp.where(idx == 1, h1, h2))
    H = jnp.where(H < 0.0, H + 360.0, H)
    H = (H % 360.0) / 360.0
    return jnp.stack([H, S, V], axis=1)


if __name__ == "__main__":
    key = jax.random.PRNGKey(0)
    k1, k2, k3 = jax.random.split(key, 3)

    # Case 1: canonical small shape (W*H multiple of 128 -> zero-copy path,
    # both batch elements folded into a single block).
    x1 = jax.random.uniform(k1, (2, 3, 16, 16), dtype=jnp.float32)
    out1 = jax.block_until_ready(rgb2hsv(x1))
    assert out1.shape == (2, 3, 16, 16)
    assert jnp.allclose(out1, rgb2hsv_ref(x1), atol=2e-5, rtol=2e-5)

    # Case 2: larger aligned shape exercising batch folding + row splitting
    # (>= 2 parallel blocks for the v7x two-TC case).
    x2 = jax.random.uniform(k2, (2, 3, 64, 64), dtype=jnp.float32)
    out2 = jax.block_until_ready(rgb2hsv(x2))
    assert out2.shape == (2, 3, 64, 64)
    assert jnp.allclose(out2, rgb2hsv_ref(x2), atol=2e-5, rtol=2e-5)

    # Case 3: odd spatial size exercising the padded fallback path.
    x3 = jax.random.uniform(k3, (2, 3, 20, 13), dtype=jnp.float32)
    out3 = jax.block_until_ready(rgb2hsv(x3))
    assert out3.shape == (2, 3, 20, 13)
    assert jnp.allclose(out3, rgb2hsv_ref(x3), atol=2e-5, rtol=2e-5)

    print("KERNEL_OK")
</pallas_src>

<mosaic_0001>
module attributes {stable_mosaic.version = 11 : i64} {
  func.func @rgb2hsv_kernel(%arg0: i32, %arg1: i32, %arg2: memref<2x3x2x128xf32, #tpu.memory_space<vmem>>, %arg3: memref<2x3x2x128xf32, #tpu.memory_space<vmem>>) attributes {dimension_semantics = [#tpu.dimension_semantics<parallel>, #tpu.dimension_semantics<parallel>], iteration_bounds = array<i64: 1, 1>, scalar_prefetch = 0 : i64, scratch_operands = 0 : i64, tpu.core_type = #tpu.core_type<tc>, window_params = [{transform_indices = @transform_0, window_bounds = array<i64: 2, 3, 2, 128>}, {transform_indices = @transform_1, window_bounds = array<i64: 2, 3, 2, 128>}]} {
    %c0 = arith.constant 0 : index
    %c0_0 = arith.constant 0 : index
    %c0_1 = arith.constant 0 : index
    %c0_2 = arith.constant 0 : index
    %0 = vector.load %arg2[%c0, %c0_0, %c0_1, %c0_2] : memref<2x3x2x128xf32, #tpu.memory_space<vmem>>, vector<2x1x2x128xf32>
    %1 = vector.shape_cast %0 : vector<2x1x2x128xf32> to vector<2x2x128xf32>
    %c0_3 = arith.constant 0 : index
    %c1 = arith.constant 1 : index
    %c0_4 = arith.constant 0 : index
    %c0_5 = arith.constant 0 : index
    %2 = vector.load %arg2[%c0_3, %c1, %c0_4, %c0_5] : memref<2x3x2x128xf32, #tpu.memory_space<vmem>>, vector<2x1x2x128xf32>
    %3 = vector.shape_cast %2 : vector<2x1x2x128xf32> to vector<2x2x128xf32>
    %c0_6 = arith.constant 0 : index
    %c2 = arith.constant 2 : index
    %c0_7 = arith.constant 0 : index
    %c0_8 = arith.constant 0 : index
    %4 = vector.load %arg2[%c0_6, %c2, %c0_7, %c0_8] : memref<2x3x2x128xf32, #tpu.memory_space<vmem>>, vector<2x1x2x128xf32>
    %5 = vector.shape_cast %4 : vector<2x1x2x128xf32> to vector<2x2x128xf32>
    %6 = arith.maximumf %1, %3 : vector<2x2x128xf32>
    %7 = arith.maximumf %6, %5 : vector<2x2x128xf32>
    %8 = arith.minimumf %1, %3 : vector<2x2x128xf32>
    %9 = arith.minimumf %8, %5 : vector<2x2x128xf32>
    %10 = arith.subf %7, %9 : vector<2x2x128xf32>
    %cst = arith.constant 9.99999974E-5 : f32
    %11 = vector.broadcast %cst : f32 to vector<2x2x128xf32>
    %12 = arith.addf %7, %11 : vector<2x2x128xf32>
    %13 = tpu.reciprocal %12 {approx = true} : vector<2x2x128xf32> -> vector<2x2x128xf32>
    %14 = arith.mulf %12, %13 : vector<2x2x128xf32>
    %cst_9 = arith.constant 2.000000e+00 : f32
    %15 = vector.broadcast %cst_9 : f32 to vector<2x2x128xf32>
    %16 = arith.subf %15, %14 : vector<2x2x128xf32>
    %17 = arith.mulf %13, %16 : vector<2x2x128xf32>
    %18 = arith.mulf %10, %17 : vector<2x2x128xf32>
    %cst_10 = arith.constant 9.99999974E-5 : f32
    %19 = vector.broadcast %cst_10 : f32 to vector<2x2x128xf32>
    %20 = arith.addf %10, %19 : vector<2x2x128xf32>
    %21 = tpu.reciprocal %20 {approx = true} : vector<2x2x128xf32> -> vector<2x2x128xf32>
    %22 = arith.mulf %20, %21 : vector<2x2x128xf32>
    %cst_11 = arith.constant 2.000000e+00 : f32
    %23 = vector.broadcast %cst_11 : f32 to vector<2x2x128xf32>
    %24 = arith.subf %23, %22 : vector<2x2x128xf32>
    %25 = arith.mulf %21, %24 : vector<2x2x128xf32>
    %cst_12 = arith.constant 0.166666672 : f32
    %26 = vector.broadcast %cst_12 : f32 to vector<2x2x128xf32>
    %27 = arith.mulf %25, %26 : vector<2x2x128xf32>
    %28 = arith.cmpf oge, %1, %3 : vector<2x2x128xf32>
    %29 = arith.cmpf oge, %1, %5 : vector<2x2x128xf32>
    %30 = arith.andi %28, %29 : vector<2x2x128xi1>
    %cst_13 = arith.constant dense<true> : vector<2x2x128xi1>
    %31 = arith.xori %30, %cst_13 : vector<2x2x128xi1>
    %32 = arith.cmpf oge, %3, %5 : vector<2x2x128xf32>
    %33 = arith.andi %31, %32 : vector<2x2x128xi1>
    %34 = arith.subf %3, %5 : vector<2x2x128xf32>
    %35 = arith.subf %5, %1 : vector<2x2x128xf32>
    %36 = arith.subf %1, %3 : vector<2x2x128xf32>
    %37 = arith.select %33, %35, %36 : vector<2x2x128xi1>, vector<2x2x128xf32>
    %38 = arith.select %30, %34, %37 : vector<2x2x128xi1>, vector<2x2x128xf32>
    %cst_14 = arith.constant 0.333333343 : f32
    %cst_15 = arith.constant 0.666666686 : f32
    %39 = vector.broadcast %cst_14 : f32 to vector<2x2x128xf32>
    %40 = vector.broadcast %cst_15 : f32 to vector<2x2x128xf32>
    %41 = arith.select %33, %39, %40 : vector<2x2x128xi1>, vector<2x2x128xf32>
    %cst_16 = arith.constant 0.000000e+00 : f32
    %42 = vector.broadcast %cst_16 : f32 to vector<2x2x128xf32>
    %43 = arith.select %30, %42, %41 : vector<2x2x128xi1>, vector<2x2x128xf32>
    %44 = arith.mulf %38, %27 : vector<2x2x128xf32>
    %45 = arith.addf %43, %44 : vector<2x2x128xf32>
    %cst_17 = arith.constant 0.000000e+00 : f32
    %46 = vector.broadcast %cst_17 : f32 to vector<2x2x128xf32>
    %47 = arith.cmpf olt, %45, %46 : vector<2x2x128xf32>
    %cst_18 = arith.constant 1.000000e+00 : f32
    %48 = vector.broadcast %cst_18 : f32 to vector<2x2x128xf32>
    %49 = arith.addf %45, %48 : vector<2x2x128xf32>
    %50 = arith.select %47, %49, %45 : vector<2x2x128xi1>, vector<2x2x128xf32>
    %c0_19 = arith.constant 0 : index
    %c0_20 = arith.constant 0 : index
    %c0_21 = arith.constant 0 : index
    %c0_22 = arith.constant 0 : index
    %51 = vector.load %arg3[%c0_19, %c0_20, %c0_21, %c0_22] : memref<2x3x2x128xf32, #tpu.memory_space<vmem>>, vector<2x1x2x128xf32>
    %52 = vector.shape_cast %51 : vector<2x1x2x128xf32> to vector<2x2x128xf32>
    %53 = vector.shape_cast %50 : vector<2x2x128xf32> to vector<2x1x2x128xf32>
    tpu.vector_store %arg3[%c0_19, %c0_20, %c0_21, %c0_22], %53 {strides = array<i32>} : memref<2x3x2x128xf32, #tpu.memory_space<vmem>>, vector<2x1x2x128xf32>,
    %c0_23 = arith.constant 0 : index
    %c1_24 = arith.constant 1 : index
    %c0_25 = arith.constant 0 : index
    %c0_26 = arith.constant 0 : index
    %54 = vector.load %arg3[%c0_23, %c1_24, %c0_25, %c0_26] : memref<2x3x2x128xf32, #tpu.memory_space<vmem>>, vector<2x1x2x128xf32>
    %55 = vector.shape_cast %54 : vector<2x1x2x128xf32> to vector<2x2x128xf32>
    %56 = vector.shape_cast %18 : vector<2x2x128xf32> to vector<2x1x2x128xf32>
    tpu.vector_store %arg3[%c0_23, %c1_24, %c0_25, %c0_26], %56 {strides = array<i32>} : memref<2x3x2x128xf32, #tpu.memory_space<vmem>>, vector<2x1x2x128xf32>,
    %c0_27 = arith.constant 0 : index
    %c2_28 = arith.constant 2 : index
    %c0_29 = arith.constant 0 : index
    %c0_30 = arith.constant 0 : index
    %57 = vector.load %arg3[%c0_27, %c2_28, %c0_29, %c0_30] : memref<2x3x2x128xf32, #tpu.memory_space<vmem>>, vector<2x1x2x128xf32>
    %58 = vector.shape_cast %57 : vector<2x1x2x128xf32> to vector<2x2x128xf32>
    %59 = vector.shape_cast %7 : vector<2x2x128xf32> to vector<2x1x2x128xf32>
    tpu.vector_store %arg3[%c0_27, %c2_28, %c0_29, %c0_30], %59 {strides = array<i32>} : memref<2x3x2x128xf32, #tpu.memory_space<vmem>>, vector<2x1x2x128xf32>,
    return
  }
  func.func @transform_0(%arg0: i32, %arg1: i32) -> (i32, i32, i32, i32) {
    %c0_i32 = arith.constant 0 : i32
    %c0_i32_0 = arith.constant 0 : i32
    %c0_i32_1 = arith.constant 0 : i32
    return %arg0, %c0_i32, %arg1, %c0_i32_0 : i32, i32, i32, i32
  }
  func.func @transform_1(%arg0: i32, %arg1: i32) -> (i32, i32, i32, i32) {
    %c0_i32 = arith.constant 0 : i32
    %c0_i32_0 = arith.constant 0 : i32
    %c0_i32_1 = arith.constant 0 : i32
    return %arg0, %c0_i32, %arg1, %c0_i32_0 : i32, i32, i32, i32
  }
}

</mosaic_0001>

<bundles_post_ra>
// kernel: tpu_custom_call.1
= control target key start
LH: loop header
LB: loop body
LE: loop exit
PB: predicated region body
PF: predicated region fallthrough
CT: control target
= control target key end

     0   :  { %6 = vsyncpa [#allocation3], 0  ;;  %s264_s0 = inlined_call_operand.hbm [shape: f32[2,3,2,128], index: 0, kind: input, shape index: {}]   ;;  %s265_s1 = inlined_call_operand.hbm [shape: f32[2,3,2,128], index: 1, kind: output, shape index: {}]  }
   0x1   :  { %7 = vsyncpa [#allocation4], 0  ;;  %s184_s6 = smov [#allocation2]  }
   0x2   :  { %s13_s7 = sshll.u32 %s184_s6, 4  ;;  %s14_s7 = int_to_ptr.vmem [resolvable:$true] %s13_s7 }
   0x3   :  { %s148_s8 = scalar_lea.vmem %s14_s7, 192  ;;  %p153_p1 = scmp.lt.s32.totalorder %s14_s7, %s14_s7 }
   0x4   :  { %p149_p0 = scmp.ne.s32.totalorder %s14_s7, %s148_s8  ;;  %p154_p2 = scmp.lt.s32.totalorder %s148_s8, %s148_s8 }
   0x6   :  { %p155_p3 = por %p154_p2, %p153_p1 }
   0x8   :  { %p156_p4 = pnand %p155_p3, %p149_p0 }
   0xa   :  { %159 = shalt.err (!%p156_p4)
}
   0xb   :  { %s185_s9 = smov 32   ;;  %s186_s10 = smov 2  }
   0xc   :  { %19 = dma.hbm_to_vmem [thread:$0]  %s264_s0, 192, %s14_s7, [#allocation3], %s185_s9, %s185_s9, %s186_s10  }
   0xd   :  { %180 = dma.done.wait [#allocation3], 192  }
   0xe   :  { %181 = vsyncadd [#allocation3], 4294967104  ;;  %v23_v0 = vld [vmem:[#allocation2] sm:$0x3]  ;;  %v26_v1 = vld [vmem:[#allocation2 + $0x2] sm:$0x3] }
   0xf   :  { %v29_v2 = vld [vmem:[#allocation2 + $0x4] sm:$0x3]  ;;  %v31_v3 = vmax.f32 %v23_v0, %v26_v1  ;;  %v35_v4 = vmin.f32 %v23_v0, %v26_v1  ;;  %v24_v5 = vld [vmem:[#allocation2 + $0x6] sm:$0x3]  ;;  %v206_v6 = vld [vmem:[#allocation2 + $0x8] sm:$0x3]  ;;  %vm65_vm0 = vcmp.ge.f32.partialorder %v23_v0, %v26_v1  ;;  %v81_v24 = vsub.f32 %v23_v0, %v26_v1 }
  0x10   :  { %v208_v7 = vld [vmem:[#allocation2 + $0xa] sm:$0x3]  ;;  %v32_v10 = vmax.f32 %v24_v5, %v206_v6  ;;  %v36_v11 = vmin.f32 %v24_v5, %v206_v6  ;;  %vm67_vm1 = vcmp.ge.f32.partialorder %v23_v0, %v29_v2  ;;  %vm66_vm3 = vcmp.ge.f32.partialorder %v24_v5, %v206_v6  ;;  %s189_s0 = smov [#allocation5]  }
  0x11   :  { %v33_v8 = vmax.f32 %v31_v3, %v29_v2  ;;  %v37_v9 = vmin.f32 %v35_v4, %v29_v2  ;;  %vm214_vm2 = vmand %vm65_vm0, %vm67_vm1  ;;  %vm68_vm4 = vcmp.ge.f32.partialorder %v24_v5, %v208_v7  ;;  %vm187_vm5 = vmmov 1   ;;  %s114_s13 = sshll.u32 %s189_s0, 4  ;;  %s115_s13 = int_to_ptr.vmem [resolvable:$true] %s114_s13 }
  0x12   :  { %v34_v13 = vmax.f32 %v32_v10, %v208_v7  ;;  %v38_v14 = vmin.f32 %v36_v11, %v208_v7  ;;  %vm71_vm6 = vmxor %vm214_vm2, %vm187_vm5  ;;  %vm73_vm7 = vcmp.ge.f32.partialorder %v26_v1, %v29_v2  ;;  %v79_v23 = vsub.f32 %v29_v2, %v23_v0  ;;  %s160_s14 = scalar_lea.vmem %s115_s13, 192  ;;  %p165_p6 = scmp.lt.s32.totalorder %s115_s13, %s115_s13 }
  0x13   :  { %v39_v12 = vsub.f32 %v33_v8, %v37_v9  ;;  %107 = vst [vmem:[#allocation5 + $0x4] sm:$0x3] %v33_v8  ;;  %v41_v16 = vadd.f32 0.0001, %v33_v8  ;;  %vm222_vm8 = vmand %vm66_vm3, %vm68_vm4  ;;  %vm74_vm11 = vcmp.ge.f32.partialorder %v206_v6, %v208_v7  ;;  %v77_v29 = vsub.f32 %v26_v1, %v29_v2  ;;  %p161_p5 = scmp.ne.s32.totalorder %s115_s13, %s160_s14  ;;  %p166_p7 = scmp.lt.s32.totalorder %s160_s14, %s160_s14 }
  0x14   :  { %108 = vst [vmem:[#allocation5 + $0xa] sm:$0x3] %v34_v13  ;;  %v42_v17 = vadd.f32 0.0001, %v34_v13  ;;  %v40_v18 = vsub.f32 %v34_v13, %v38_v14  ;;  %vm226_vm9 = vmand %vm71_vm6, %vm73_vm7  ;;  %v80_v30 = vsub.f32 %v208_v7, %v24_v5  ;;  %v82_v31 = vsub.f32 %v24_v5, %v206_v6 }
  0x15   :  { %v53_v15 = vadd.f32 0.0001, %v39_v12  ;;  %vm72_vm10 = vmxor %vm222_vm8, %vm187_vm5  ;;  %v83_v35 = vsel %vm226_vm9, %v79_v23, %v81_v24  ;;  %v188_v41 = vmov 0.6666667   ;;  %v78_v43 = vsub.f32 %v206_v6, %v208_v7  ;;  %p167_p8 = por %p166_p7, %p165_p6 }
  0x16   :  { %v54_v19 = vadd.f32 0.0001, %v40_v18  ;;  %vm238_vm12 = vmand %vm72_vm10, %vm74_vm11  ;;  %v87_v42 = vsel %vm226_vm9, 0.33333334, %v188_v41  ;;  %v85_v45 = vsel %vm214_vm2, %v77_v29, %v83_v35 }
  0x17   :  { %132 = vrcp.f32 %v53_v15  ;;  %v84_v47 = vsel %vm238_vm12, %v80_v30, %v82_v31  ;;  %v89_v51 = vsel %vm214_vm2, 0.0, %v87_v42  ;;  %v88_v53 = vsel %vm238_vm12, 0.33333334, %v188_v41  ;;  %p168_p9 = pnand %p167_p8, %p161_p5 }
  0x18   :  { %134 = vrcp.f32 %v41_v16  ;;  %v86_v56 = vsel %vm222_vm8, %v78_v43, %v84_v47  ;;  %v90_v60 = vsel %vm222_vm8, 0.0, %v88_v53 }
  0x19   :  { %136 = vrcp.f32 %v42_v17 }
  0x1a   :  { %138 = vrcp.f32 %v54_v19 }
  0x24   :  { %v133_v25 = vpop.eup %132 }
  0x25   :  { %v135_v26 = vpop.eup %134  ;;  %v57_v27 = vmul.f32 %v133_v25, %v53_v15 }
  0x26   :  { %v137_v28 = vpop.eup %136  ;;  %v45_v32 = vmul.f32 %v135_v26, %v41_v16 }
  0x27   :  { %v139_v33 = vpop.eup %138  ;;  %v59_v34 = vsub.f32 2.0, %v57_v27  ;;  %v46_v37 = vmul.f32 %v137_v28, %v42_v17 }
  0x28   :  { %v58_v38 = vmul.f32 %v139_v33, %v54_v19  ;;  %v47_v39 = vsub.f32 2.0, %v45_v32 }
  0x29   :  { %v61_v40 = vmul.f32 %v133_v25, %v59_v34  ;;  %v48_v44 = vsub.f32 2.0, %v46_v37 }
  0x2a   :  { %v60_v46 = vsub.f32 2.0, %v58_v38  ;;  %v49_v48 = vmul.f32 %v135_v26, %v47_v39 }
  0x2b   :  { %v63_v49 = vmul.f32 0.16666667, %v61_v40  ;;  %v50_v50 = vmul.f32 %v137_v28, %v48_v44 }
  0x2c   :  { %v62_v52 = vmul.f32 %v139_v33, %v60_v46  ;;  %v51_v54 = vmul.f32 %v49_v48, %v39_v12 }
  0x2d   :  { %v91_v55 = vmul.f32 %v85_v45, %v63_v49  ;;  %v52_v57 = vmul.f32 %v50_v50, %v40_v18 }
  0x2e   :  { %v64_v58 = vmul.f32 0.16666667, %v62_v52  ;;  %104 = vst [vmem:[#allocation5 + $0x2] sm:$0x3] %v51_v54 }
  0x2f   :  { %v93_v59 = vadd.f32 %v91_v55, %v89_v51  ;;  %105 = vst [vmem:[#allocation5 + $0x8] sm:$0x3] %v52_v57 }
  0x30   :  { %v92_v61 = vmul.f32 %v86_v56, %v64_v58 }
  0x31   :  { %vm95_vm13 = vcmp.lt.f32.partialorder %v93_v59, 0.0  ;;  %v97_v62 = vadd.f32 1.0, %v93_v59 }
  0x32   :  { %v94_v63 = vadd.f32 %v92_v61, %v90_v60 }
  0x33   :  { %v99_v0 = vsel %vm95_vm13, %v97_v62, %v93_v59 }
  0x34   :  { %101 = vst [vmem:[#allocation5] sm:$0x3] %v99_v0  ;;  %vm96_vm14 = vcmp.lt.f32.partialorder %v94_v63, 0.0  ;;  %v98_v1 = vadd.f32 1.0, %v94_v63 }
  0x36   :  { %v100_v2 = vsel %vm96_vm14, %v98_v1, %v94_v63 }
  0x37   :  { %102 = vst [vmem:[#allocation5 + $0x6] sm:$0x3] %v100_v2 }
  0x38   :  { %171 = shalt.err (!%p168_p9)
}
  0x39   :  { %120 = dma.vmem_to_hbm [thread:$0]  %s115_s13, 192, %s265_s1, [#allocation4], %s185_s9, %s185_s9, %s186_s10  }
  0x3a   :  { %182 = dma.done.wait [#allocation4], 192  }
  0x3b   :  { %183 = vsyncadd [#allocation4], 4294967104 }
  0x3c   :  { %124 = vsyncpa [#allocation3], 1 }
  0x3d   :  { %125 = vsyncpa [#allocation4], 1 }

</bundles_post_ra>
